<compile_context>
chip_gen: v7x
topology: tpu7x:2x2x1
jax: 0.10.0
libtpu: 0.0.40
codegen_flags: <defaults>
</compile_context>

<pallas_src>
import functools

import jax
import jax.numpy as jnp
from jax import lax
from jax.experimental import pallas as pl
from jax.experimental.pallas import tpu as pltpu


# Scoped-VMEM budget: well above the 16/32 MiB defaults, with headroom under
# v7x's 64 MiB physical VMEM.
_VMEM_LIMIT_BYTES = 56 * 1024 * 1024

# Large finite negative instead of -inf: robust even if a row were fully masked.
_MASK_VALUE = -1e30


# ----------------------------------------------------------------------------
# tiling helpers
# ----------------------------------------------------------------------------
def _row_tile(m, target=256):
    """Largest row tile <= target that divides m (multiple of 8), else full m."""
    if m <= target:
        return m
    t = (target // 8) * 8
    while t >= 8:
        if m % t == 0:
            return t
        t -= 8
    return m  # fall back to a single full block


def _seq_tile(t, target=128):
    if t <= target:
        return t
    b = (target // 8) * 8
    while b >= 8:
        if t % b == 0:
            return b
        b -= 8
    return t


def _const_spec(block_shape, index_map, single_buffer):
    """BlockSpec for grid-invariant operands (weights / bias).

    Their block index never changes, so double-buffering them is pure VMEM
    waste (matters at large E, especially under v7x's 64 MiB VMEM).  If this
    jax build rejects pl.Buffered(1) the caller falls back to default specs.
    """
    if single_buffer:
        return pl.BlockSpec(block_shape, index_map, pipeline_mode=pl.Buffered(1))
    return pl.BlockSpec(block_shape, index_map)


# ----------------------------------------------------------------------------
# Kernel 1: fused all-head QKV projection
#   q = (x @ Wq_full) * E^-0.5 ; k = x @ Wk_full ; v = x @ Wv_full
#   (W*_full are (E, NH*H) with head h in columns h*H:(h+1)*H)
# ----------------------------------------------------------------------------
def _qkv_kernel(x_ref, wq_ref, wk_ref, wv_ref, q_ref, k_ref, v_ref, *, scale):
    x = x_ref[...]
    q = jnp.dot(x, wq_ref[...], preferred_element_type=jnp.float32) * scale
    q_ref[...] = q.astype(q_ref.dtype)
    k_ref[...] = jnp.dot(x, wk_ref[...],
                         preferred_element_type=jnp.float32).astype(k_ref.dtype)
    v_ref[...] = jnp.dot(x, wv_ref[...],
                         preferred_element_type=jnp.float32).astype(v_ref.dtype)


def qkv_projection(x2d, wq_full, wk_full, wv_full, *, scale, out_dtype,
                   single_buffer_consts=True):
    """x2d: (M, E); w*_full: (E, E) -> three (M, E) arrays (q pre-scaled)."""
    M, E = x2d.shape
    tm = _row_tile(M)
    grid = (M // tm,)
    kernel = functools.partial(_qkv_kernel, scale=scale)
    out_sds = jax.ShapeDtypeStruct((M, E), out_dtype)
    row_map = lambda i: (i, 0)
    full_map = lambda i: (0, 0)
    return pl.pallas_call(
        kernel,
        out_shape=(out_sds, out_sds, out_sds),
        grid_spec=pltpu.PrefetchScalarGridSpec(
            num_scalar_prefetch=0,
            grid=grid,
            in_specs=[
                pl.BlockSpec((tm, E), row_map),
                _const_spec((E, E), full_map, single_buffer_consts),
                _const_spec((E, E), full_map, single_buffer_consts),
                _const_spec((E, E), full_map, single_buffer_consts),
            ],
            out_specs=(
                pl.BlockSpec((tm, E), row_map),
                pl.BlockSpec((tm, E), row_map),
                pl.BlockSpec((tm, E), row_map),
            ),
        ),
        compiler_params=pltpu.CompilerParams(
            dimension_semantics=("parallel",),
            vmem_limit_bytes=_VMEM_LIMIT_BYTES),
    )(x2d, wq_full, wk_full, wv_full)


# ----------------------------------------------------------------------------
# Kernel 2: flash-style causal multi-head attention + fused output projection
#   grid = (B, num_q_tiles, num_kv_tiles); kv axis is the reduction axis.
# ----------------------------------------------------------------------------
def _flash_mha_kernel(q_ref, k_ref, v_ref, wp_ref, b_ref, o_ref,
                      qh_sc, m_sc, l_sc, acc_sc, *,
                      num_heads, head_size, block_q, block_k,
                      approx_recip, exp_dtype):
    qi = pl.program_id(1)
    ki = pl.program_id(2)
    embed = num_heads * head_size

    def split_heads(x2d):
        # (rows, NH*H) lane-dense tile -> (NH, rows, H) head-batched value.
        return jnp.stack(
            [x2d[:, h * head_size:(h + 1) * head_size] for h in range(num_heads)],
            axis=0)

    @pl.when(ki == 0)
    def _init():
        m_sc[...] = jnp.full_like(m_sc, -jnp.inf)
        l_sc[...] = jnp.zeros_like(l_sc)
        acc_sc[...] = jnp.zeros_like(acc_sc)
        # q tile is constant across the whole kv loop: split heads only once.
        qh_sc[...] = split_heads(q_ref[0])

    def _attend(mask_diag):
        q = qh_sc[...]                       # (NH, bq, H)  compute dtype
        k = split_heads(k_ref[0])            # (NH, bk, H)
        v = split_heads(v_ref[0])            # (NH, bk, H)

        # scores; 1/sqrt(E) scale already folded into q by kernel 1
        s = jnp.einsum('hqd,hkd->hqk', q, k,
                       preferred_element_type=jnp.float32)   # (NH, bq, bk) f32
        if mask_diag:
            row = lax.broadcasted_iota(jnp.int32, (block_q, block_k), 0)
            col = lax.broadcasted_iota(jnp.int32, (block_q, block_k), 1)
            s = jnp.where((row >= col)[None], s, _MASK_VALUE)

        # online softmax (head-batched, f32 state)
        m_prev = m_sc[...]                                   # (NH, bq, 1)
        m_new = jnp.maximum(m_prev, jnp.max(s, axis=-1, keepdims=True))
        alpha = jnp.exp(m_prev - m_new)
        # exp_dtype=bf16 uses the bf16 EUP path on v6e/v7x (keep f32 on v5e).
        p = jnp.exp((s - m_new).astype(exp_dtype))
        l_sc[...] = alpha * l_sc[...] + jnp.sum(
            p.astype(jnp.float32), axis=-1, keepdims=True)
        acc_sc[...] = alpha * acc_sc[...] + jnp.einsum(
            'hqk,hkd->hqd', p.astype(v.dtype), v,
            preferred_element_type=jnp.float32)
        m_sc[...] = m_new

    # Causal: kv tiles strictly above the diagonal are skipped entirely (and
    # their DMA is suppressed by the clamped index map).  The triangular mask
    # is only built/applied on the diagonal tile.
    @pl.when(ki < qi)
    def _below():
        _attend(mask_diag=False)

    @pl.when(ki == qi)
    def _diag():
        _attend(mask_diag=True)

    @pl.when(ki == pl.num_programs(2) - 1)
    def _finalize():
        # one broadcasted normalize (no per-head lane-sliced RMWs)
        inv = pl.reciprocal(l_sc[...], approx=approx_recip)   # (NH, bq, 1)
        y = (acc_sc[...] * inv).astype(wp_ref.dtype)          # (NH, bq, H)
        # fused output projection: concat(heads) @ W^T + b, accumulated per
        # head with leading-dim indexing only; output stays lane-dense (bq,E).
        o = jnp.zeros((block_q, embed), jnp.float32)
        for h in range(num_heads):
            o = o + jnp.dot(y[h], wp_ref[h], preferred_element_type=jnp.float32)
        o_ref[0] = (o + b_ref[...]).astype(o_ref.dtype)


def flash_mha_projection(q, k, v, wp_heads, bias, *, num_heads, head_size,
                         block=128, approx_recip=True, exp_dtype=jnp.float32,
                         out_dtype=jnp.float32, single_buffer_consts=True):
    """q/k/v: (B, T, E); wp_heads: (NH, H, E) = W_proj^T split per head; bias: (1, E)."""
    B, T, E = q.shape
    bt = _seq_tile(T, block)
    nq = T // bt
    nk = nq
    kernel = functools.partial(
        _flash_mha_kernel, num_heads=num_heads, head_size=head_size,
        block_q=bt, block_k=bt, approx_recip=approx_recip, exp_dtype=exp_dtype)

    q_map = lambda b, i, j: (b, i, 0)
    # Clamp K/V to the causal region: skipped (above-diagonal) steps repeat the
    # previous block index so Pallas issues no new DMA (~2x less K/V HBM read).
    kv_map = lambda b, i, j: (b, jnp.minimum(j, i), 0)

    return pl.pallas_call(
        kernel,
        out_shape=jax.ShapeDtypeStruct((B, T, E), out_dtype),
        grid_spec=pltpu.PrefetchScalarGridSpec(
            num_scalar_prefetch=0,
            grid=(B, nq, nk),
            in_specs=[
                pl.BlockSpec((1, bt, E), q_map),                       # q
                pl.BlockSpec((1, bt, E), kv_map),                      # k
                pl.BlockSpec((1, bt, E), kv_map),                      # v
                _const_spec((num_heads, head_size, E),
                            lambda b, i, j: (0, 0, 0), single_buffer_consts),
                _const_spec((1, E), lambda b, i, j: (0, 0), single_buffer_consts),
            ],
            out_specs=pl.BlockSpec((1, bt, E), q_map),
            scratch_shapes=[
                pltpu.VMEM((num_heads, bt, head_size), q.dtype),       # split-head q
                pltpu.VMEM((num_heads, bt, 1), jnp.float32),           # m (running max)
                pltpu.VMEM((num_heads, bt, 1), jnp.float32),           # l (running sum)
                pltpu.VMEM((num_heads, bt, head_size), jnp.float32),   # acc
            ],
        ),
        compiler_params=pltpu.CompilerParams(
            dimension_semantics=("parallel", "parallel", "arbitrary"),
            vmem_limit_bytes=_VMEM_LIMIT_BYTES),
    )(q, k, v, wp_heads, bias)


# ----------------------------------------------------------------------------
# Full MultiHeadAttention forward
# ----------------------------------------------------------------------------
def _mha_forward(x, params, *, compute_dtype, approx_reciprocal, exp_dtype,
                 single_buffer_consts):
    B, T, E = x.shape
    wq, wk, wv = params["wq"], params["wk"], params["wv"]      # (NH, E, H)
    w_proj, b_proj = params["w_proj"], params["b_proj"]        # (E, E), (E,)
    NH, _, H = wq.shape
    assert NH * H == E, "concat of heads must match projection in-features"

    # NOTE: the PyTorch reference scales by embedding_dim ** -0.5 (not head_size).
    scale = E ** -0.5
    cdt = compute_dtype

    # stack per-head weights -> (E, NH*H); head h occupies columns h*H:(h+1)*H
    wq_full = jnp.transpose(wq, (1, 0, 2)).reshape(E, NH * H).astype(cdt)
    wk_full = jnp.transpose(wk, (1, 0, 2)).reshape(E, NH * H).astype(cdt)
    wv_full = jnp.transpose(wv, (1, 0, 2)).reshape(E, NH * H).astype(cdt)

    q2, k2, v2 = qkv_projection(x.reshape(B * T, E).astype(cdt),
                                wq_full, wk_full, wv_full,
                                scale=scale, out_dtype=cdt,
                                single_buffer_consts=single_buffer_consts)
    q = q2.reshape(B, T, E)
    k = k2.reshape(B, T, E)
    v = v2.reshape(B, T, E)

    # W_proj^T split per head: row block h of W^T multiplies head h's output.
    wp_heads = jnp.transpose(w_proj).reshape(NH, H, E).astype(cdt)
    bias = b_proj.reshape(1, E).astype(jnp.float32)

    return flash_mha_projection(
        q, k, v, wp_heads, bias,
        num_heads=NH, head_size=H,
        approx_recip=approx_reciprocal,
        exp_dtype=exp_dtype,
        out_dtype=jnp.float32,
        single_buffer_consts=single_buffer_consts)


def multi_head_attention(x, params, *, compute_dtype=jnp.bfloat16,
                         approx_reciprocal=True, exp_dtype=jnp.float32):
    """x: (B, T, E) float32 -> (B, T, E) float32 (eval mode, dropout=identity).

    exp_dtype=jnp.bfloat16 is recommended on v6e/v7x (bf16 EUP); keep float32
    on v5e.  Default is float32 (safe everywhere).
    """
    try:
        return _mha_forward(x, params, compute_dtype=compute_dtype,
                            approx_reciprocal=approx_reciprocal,
                            exp_dtype=exp_dtype, single_buffer_consts=True)
    except Exception:
        # pl.Buffered(1) on constant operands not supported by this jax/libtpu
        # build: fall back to default double-buffered constants (same math).
        return _mha_forward(x, params, compute_dtype=compute_dtype,
                            approx_reciprocal=approx_reciprocal,
                            exp_dtype=exp_dtype, single_buffer_consts=False)


def init_params(key, num_heads, head_size, embedding_dim):
    ks = jax.random.split(key, 5)
    s = embedding_dim ** -0.5
    # per-head linear weights stored as (NH, E, H) so that x @ W == nn.Linear(x)
    wq = jax.random.normal(ks[0], (num_heads, embedding_dim, head_size), jnp.float32) * s
    wk = jax.random.normal(ks[1], (num_heads, embedding_dim, head_size), jnp.float32) * s
    wv = jax.random.normal(ks[2], (num_heads, embedding_dim, head_size), jnp.float32) * s
    # projection: PyTorch nn.Linear weight is (out, in); y = x @ W^T + b
    w_proj = jax.random.normal(ks[3], (embedding_dim, embedding_dim), jnp.float32) * s
    b_proj = jax.random.normal(ks[4], (embedding_dim,), jnp.float32) * 0.01
    return {"wq": wq, "wk": wk, "wv": wv, "w_proj": w_proj, "b_proj": b_proj}


def _reference(x, params):
    """Pure-JAX reference mirroring the PyTorch forward (eval mode)."""
    B, T, E = x.shape
    outs = []
    NH = params["wq"].shape[0]
    for h in range(NH):
        q = x @ params["wq"][h]
        k = x @ params["wk"][h]
        v = x @ params["wv"][h]
        wei = (q @ jnp.swapaxes(k, -2, -1)) * (E ** -0.5)
        mask = jnp.tril(jnp.ones((T, T), bool))
        wei = jnp.where(mask, wei, -jnp.inf)
        wei = jax.nn.softmax(wei, axis=-1)
        outs.append(wei @ v)
    cat = jnp.concatenate(outs, axis=-1)
    return cat @ params["w_proj"].T + params["b_proj"]


if __name__ == "__main__":
    B, T, E = 2, 8, 32
    NUM_HEADS = 4
    HEAD_SIZE = E // NUM_HEADS  # 8

    key = jax.random.PRNGKey(0)
    kx, kp = jax.random.split(key)
    x = jax.random.normal(kx, (B, T, E), jnp.float32)
    params = init_params(kp, NUM_HEADS, HEAD_SIZE, E)

    ref = _reference(x, params)

    # Exact-math validation path (f32 MXU operands, exact reciprocal).
    out_exact = jax.block_until_ready(
        multi_head_attention(x, params, compute_dtype=jnp.float32,
                             approx_reciprocal=False))
    assert out_exact.shape == (B, T, E), out_exact.shape
    assert jnp.allclose(out_exact, ref, atol=2e-3, rtol=2e-3), \
        "f32 kernel mismatch vs reference"

    # Default fast path (bf16 MXU operands, f32 accumulation, approx reciprocal).
    out_fast = jax.block_until_ready(multi_head_attention(x, params))
    assert out_fast.shape == (B, T, E), out_fast.shape
    assert jnp.allclose(out_fast, ref, atol=1.5e-1, rtol=1e-1), \
        "bf16 kernel mismatch vs reference"

    print("KERNEL_OK")
</pallas_src>

<mosaic_0001>
module attributes {stable_mosaic.version = 11 : i64} {
  func.func @_qkv_kernel(%arg0: i32, %arg1: memref<16x32xf32, #tpu.memory_space<vmem>>, %arg2: memref<32x32xf32, #tpu.memory_space<vmem>>, %arg3: memref<32x32xf32, #tpu.memory_space<vmem>>, %arg4: memref<32x32xf32, #tpu.memory_space<vmem>>, %arg5: memref<16x32xf32, #tpu.memory_space<vmem>>, %arg6: memref<16x32xf32, #tpu.memory_space<vmem>>, %arg7: memref<16x32xf32, #tpu.memory_space<vmem>>) attributes {dimension_semantics = [#tpu.dimension_semantics<parallel>], iteration_bounds = array<i64: 1>, scalar_prefetch = 0 : i64, scratch_operands = 0 : i64, tpu.core_type = #tpu.core_type<tc>, window_params = [{transform_indices = @transform_0, window_bounds = array<i64: 16, 32>}, {pipeline_mode = #tpu.pipeline_mode<synchronous>, transform_indices = @transform_1, window_bounds = array<i64: 32, 32>}, {pipeline_mode = #tpu.pipeline_mode<synchronous>, transform_indices = @transform_2, window_bounds = array<i64: 32, 32>}, {pipeline_mode = #tpu.pipeline_mode<synchronous>, transform_indices = @transform_3, window_bounds = array<i64: 32, 32>}, {transform_indices = @transform_4, window_bounds = array<i64: 16, 32>}, {transform_indices = @transform_5, window_bounds = array<i64: 16, 32>}, {transform_indices = @transform_6, window_bounds = array<i64: 16, 32>}]} {
    %c0 = arith.constant 0 : index
    %c0_0 = arith.constant 0 : index
    %0 = vector.load %arg1[%c0, %c0_0] : memref<16x32xf32, #tpu.memory_space<vmem>>, vector<16x32xf32>
    %c0_1 = arith.constant 0 : index
    %c0_2 = arith.constant 0 : index
    %1 = vector.load %arg2[%c0_1, %c0_2] : memref<32x32xf32, #tpu.memory_space<vmem>>, vector<32x32xf32>
    %cst = arith.constant dense<0.000000e+00> : vector<16x32xf32>
    %2 = tpu.matmul %0, %1, %cst {dimension_numbers = #tpu.dot_dimension_numbers<[1], [0], [0], [1], [0, 0, 1, 1], [], []>} : vector<16x32xf32>, vector<32x32xf32>, vector<16x32xf32> -> vector<16x32xf32>
    %cst_3 = arith.constant 0.176776692 : f32
    %3 = vector.broadcast %cst_3 : f32 to vector<16x32xf32>
    %4 = arith.mulf %2, %3 : vector<16x32xf32>
    %c0_4 = arith.constant 0 : index
    %c0_5 = arith.constant 0 : index
    %5 = vector.load %arg5[%c0_4, %c0_5] : memref<16x32xf32, #tpu.memory_space<vmem>>, vector<16x32xf32>
    tpu.vector_store %arg5[%c0_4, %c0_5], %4 {strides = array<i32>} : memref<16x32xf32, #tpu.memory_space<vmem>>, vector<16x32xf32>,
    %c0_6 = arith.constant 0 : index
    %c0_7 = arith.constant 0 : index
    %6 = vector.load %arg3[%c0_6, %c0_7] : memref<32x32xf32, #tpu.memory_space<vmem>>, vector<32x32xf32>
    %cst_8 = arith.constant dense<0.000000e+00> : vector<16x32xf32>
    %7 = tpu.matmul %0, %6, %cst_8 {dimension_numbers = #tpu.dot_dimension_numbers<[1], [0], [0], [1], [0, 0, 1, 1], [], []>} : vector<16x32xf32>, vector<32x32xf32>, vector<16x32xf32> -> vector<16x32xf32>
    %c0_9 = arith.constant 0 : index
    %c0_10 = arith.constant 0 : index
    %8 = vector.load %arg6[%c0_9, %c0_10] : memref<16x32xf32, #tpu.memory_space<vmem>>, vector<16x32xf32>
    tpu.vector_store %arg6[%c0_9, %c0_10], %7 {strides = array<i32>} : memref<16x32xf32, #tpu.memory_space<vmem>>, vector<16x32xf32>,
    %c0_11 = arith.constant 0 : index
    %c0_12 = arith.constant 0 : index
    %9 = vector.load %arg4[%c0_11, %c0_12] : memref<32x32xf32, #tpu.memory_space<vmem>>, vector<32x32xf32>
    %cst_13 = arith.constant dense<0.000000e+00> : vector<16x32xf32>
    %10 = tpu.matmul %0, %9, %cst_13 {dimension_numbers = #tpu.dot_dimension_numbers<[1], [0], [0], [1], [0, 0, 1, 1], [], []>} : vector<16x32xf32>, vector<32x32xf32>, vector<16x32xf32> -> vector<16x32xf32>
    %c0_14 = arith.constant 0 : index
    %c0_15 = arith.constant 0 : index
    %11 = vector.load %arg7[%c0_14, %c0_15] : memref<16x32xf32, #tpu.memory_space<vmem>>, vector<16x32xf32>
    tpu.vector_store %arg7[%c0_14, %c0_15], %10 {strides = array<i32>} : memref<16x32xf32, #tpu.memory_space<vmem>>, vector<16x32xf32>,
    return
  }
  func.func @transform_0(%arg0: i32) -> (i32, i32) {
    %c0_i32 = arith.constant 0 : i32
    %c0_i32_0 = arith.constant 0 : i32
    return %arg0, %c0_i32 : i32, i32
  }
  func.func @transform_1(%arg0: i32) -> (i32, i32) {
    %c0_i32 = arith.constant 0 : i32
    %c0_i32_0 = arith.constant 0 : i32
    %c0_i32_1 = arith.constant 0 : i32
    return %c0_i32, %c0_i32_0 : i32, i32
  }
  func.func @transform_2(%arg0: i32) -> (i32, i32) {
    %c0_i32 = arith.constant 0 : i32
    %c0_i32_0 = arith.constant 0 : i32
    %c0_i32_1 = arith.constant 0 : i32
    return %c0_i32, %c0_i32_0 : i32, i32
  }
  func.func @transform_3(%arg0: i32) -> (i32, i32) {
    %c0_i32 = arith.constant 0 : i32
    %c0_i32_0 = arith.constant 0 : i32
    %c0_i32_1 = arith.constant 0 : i32
    return %c0_i32, %c0_i32_0 : i32, i32
  }
  func.func @transform_4(%arg0: i32) -> (i32, i32) {
    %c0_i32 = arith.constant 0 : i32
    %c0_i32_0 = arith.constant 0 : i32
    return %arg0, %c0_i32 : i32, i32
  }
  func.func @transform_5(%arg0: i32) -> (i32, i32) {
    %c0_i32 = arith.constant 0 : i32
    %c0_i32_0 = arith.constant 0 : i32
    return %arg0, %c0_i32 : i32, i32
  }
  func.func @transform_6(%arg0: i32) -> (i32, i32) {
    %c0_i32 = arith.constant 0 : i32
    %c0_i32_0 = arith.constant 0 : i32
    return %arg0, %c0_i32 : i32, i32
  }
}

module attributes {stable_mosaic.version = 11 : i64} {
  func.func @_qkv_kernel(%arg0: i32, %arg1: memref<16x32xf32, #tpu.memory_space<vmem>>, %arg2: memref<32x32xf32, #tpu.memory_space<vmem>>, %arg3: memref<32x32xf32, #tpu.memory_space<vmem>>, %arg4: memref<32x32xf32, #tpu.memory_space<vmem>>, %arg5: memref<16x32xf32, #tpu.memory_space<vmem>>, %arg6: memref<16x32xf32, #tpu.memory_space<vmem>>, %arg7: memref<16x32xf32, #tpu.memory_space<vmem>>) attributes {dimension_semantics = [#tpu.dimension_semantics<parallel>], iteration_bounds = array<i64: 1>, scalar_prefetch = 0 : i64, scratch_operands = 0 : i64, tpu.core_type = #tpu.core_type<tc>, window_params = [{transform_indices = @transform_0, window_bounds = array<i64: 16, 32>}, {pipeline_mode = #tpu.pipeline_mode<synchronous>, transform_indices = @transform_1, window_bounds = array<i64: 32, 32>}, {pipeline_mode = #tpu.pipeline_mode<synchronous>, transform_indices = @transform_2, window_bounds = array<i64: 32, 32>}, {pipeline_mode = #tpu.pipeline_mode<synchronous>, transform_indices = @transform_3, window_bounds = array<i64: 32, 32>}, {transform_indices = @transform_4, window_bounds = array<i64: 16, 32>}, {transform_indices = @transform_5, window_bounds = array<i64: 16, 32>}, {transform_indices = @transform_6, window_bounds = array<i64: 16, 32>}]} {
    %c0 = arith.constant 0 : index
    %c0_0 = arith.constant 0 : index
    %0 = vector.load %arg1[%c0, %c0_0] : memref<16x32xf32, #tpu.memory_space<vmem>>, vector<16x32xf32>
    %c0_1 = arith.constant 0 : index
    %c0_2 = arith.constant 0 : index
    %1 = vector.load %arg2[%c0_1, %c0_2] : memref<32x32xf32, #tpu.memory_space<vmem>>, vector<32x32xf32>
    %cst = arith.constant dense<0.000000e+00> : vector<16x32xf32>
    %2 = tpu.matmul %0, %1, %cst {dimension_numbers = #tpu.dot_dimension_numbers<[1], [0], [0], [1], [0, 0, 1, 1], [], []>} : vector<16x32xf32>, vector<32x32xf32>, vector<16x32xf32> -> vector<16x32xf32>
    %cst_3 = arith.constant 0.176776692 : f32
    %3 = vector.broadcast %cst_3 : f32 to vector<16x32xf32>
    %4 = arith.mulf %2, %3 : vector<16x32xf32>
    %c0_4 = arith.constant 0 : index
    %c0_5 = arith.constant 0 : index
    %5 = vector.load %arg5[%c0_4, %c0_5] : memref<16x32xf32, #tpu.memory_space<vmem>>, vector<16x32xf32>
    tpu.vector_store %arg5[%c0_4, %c0_5], %4 {strides = array<i32>} : memref<16x32xf32, #tpu.memory_space<vmem>>, vector<16x32xf32>,
    %c0_6 = arith.constant 0 : index
    %c0_7 = arith.constant 0 : index
    %6 = vector.load %arg3[%c0_6, %c0_7] : memref<32x32xf32, #tpu.memory_space<vmem>>, vector<32x32xf32>
    %cst_8 = arith.constant dense<0.000000e+00> : vector<16x32xf32>
    %7 = tpu.matmul %0, %6, %cst_8 {dimension_numbers = #tpu.dot_dimension_numbers<[1], [0], [0], [1], [0, 0, 1, 1], [], []>} : vector<16x32xf32>, vector<32x32xf32>, vector<16x32xf32> -> vector<16x32xf32>
    %c0_9 = arith.constant 0 : index
    %c0_10 = arith.constant 0 : index
    %8 = vector.load %arg6[%c0_9, %c0_10] : memref<16x32xf32, #tpu.memory_space<vmem>>, vector<16x32xf32>
    tpu.vector_store %arg6[%c0_9, %c0_10], %7 {strides = array<i32>} : memref<16x32xf32, #tpu.memory_space<vmem>>, vector<16x32xf32>,
    %c0_11 = arith.constant 0 : index
    %c0_12 = arith.constant 0 : index
    %9 = vector.load %arg4[%c0_11, %c0_12] : memref<32x32xf32, #tpu.memory_space<vmem>>, vector<32x32xf32>
    %cst_13 = arith.constant dense<0.000000e+00> : vector<16x32xf32>
    %10 = tpu.matmul %0, %9, %cst_13 {dimension_numbers = #tpu.dot_dimension_numbers<[1], [0], [0], [1], [0, 0, 1, 1], [], []>} : vector<16x32xf32>, vector<32x32xf32>, vector<16x32xf32> -> vector<16x32xf32>
    %c0_14 = arith.constant 0 : index
    %c0_15 = arith.constant 0 : index
    %11 = vector.load %arg7[%c0_14, %c0_15] : memref<16x32xf32, #tpu.memory_space<vmem>>, vector<16x32xf32>
    tpu.vector_store %arg7[%c0_14, %c0_15], %10 {strides = array<i32>} : memref<16x32xf32, #tpu.memory_space<vmem>>, vector<16x32xf32>,
    return
  }
  func.func @transform_0(%arg0: i32) -> (i32, i32) {
    %c0_i32 = arith.constant 0 : i32
    %c0_i32_0 = arith.constant 0 : i32
    return %arg0, %c0_i32 : i32, i32
  }
  func.func @transform_1(%arg0: i32) -> (i32, i32) {
    %c0_i32 = arith.constant 0 : i32
    %c0_i32_0 = arith.constant 0 : i32
    %c0_i32_1 = arith.constant 0 : i32
    return %c0_i32, %c0_i32_0 : i32, i32
  }
  func.func @transform_2(%arg0: i32) -> (i32, i32) {
    %c0_i32 = arith.constant 0 : i32
    %c0_i32_0 = arith.constant 0 : i32
    %c0_i32_1 = arith.constant 0 : i32
    return %c0_i32, %c0_i32_0 : i32, i32
  }
  func.func @transform_3(%arg0: i32) -> (i32, i32) {
    %c0_i32 = arith.constant 0 : i32
    %c0_i32_0 = arith.constant 0 : i32
    %c0_i32_1 = arith.constant 0 : i32
    return %c0_i32, %c0_i32_0 : i32, i32
  }
  func.func @transform_4(%arg0: i32) -> (i32, i32) {
    %c0_i32 = arith.constant 0 : i32
    %c0_i32_0 = arith.constant 0 : i32
    return %arg0, %c0_i32 : i32, i32
  }
  func.func @transform_5(%arg0: i32) -> (i32, i32) {
    %c0_i32 = arith.constant 0 : i32
    %c0_i32_0 = arith.constant 0 : i32
    return %arg0, %c0_i32 : i32, i32
  }
  func.func @transform_6(%arg0: i32) -> (i32, i32) {
    %c0_i32 = arith.constant 0 : i32
    %c0_i32_0 = arith.constant 0 : i32
    return %arg0, %c0_i32 : i32, i32
  }
}

</mosaic_0001>

<bundles_post_ra>
// kernel: tpu_custom_call.1
= control target key start
LH: loop header
LB: loop body
LE: loop exit
PB: predicated region body
PF: predicated region fallthrough
CT: control target
= control target key end

     0   :  { %12 = vsyncpa [#allocation3], 0  ;;  %s820_s0 = inlined_call_operand.hbm [shape: f32[16,32], index: 0, kind: input, shape index: {}]   ;;  %s821_s1 = inlined_call_operand.hbm [shape: f32[32,32], index: 1, kind: input, shape index: {}]   ;;  %s822_s2 = inlined_call_operand.hbm [shape: f32[32,32], index: 2, kind: input, shape index: {}]   ;;  %s823_s3 = inlined_call_operand.hbm [shape: f32[32,32], index: 3, kind: input, shape index: {}]   ;;  %s824_s4 = inlined_call_operand.hbm [shape: f32[16,32], index: 4, kind: output, shape index: {0}]   ;;  %s825_s5 = inlined_call_operand.hbm [shape: f32[16,32], index: 5, kind: output, shape index: {1}]   ;;  %s826_s6 = inlined_call_operand.hbm [shape: f32[16,32], index: 6, kind: output, shape index: {2}]  }
   0x1   :  { %13 = vsyncpa [#allocation6], 0 }
   0x2   :  { %14 = vsyncpa [#allocation9], 0 }
   0x3   :  { %15 = vsyncpa [#allocation4], 0 }
   0x4   :  { %16 = vsyncpa [#allocation12], 0  ;;  %s635_s21 = smov [#allocation5]   ;;  %s636_s23 = smov [#allocation2]  }
   0x5   :  { %s34_s22 = sshll.u32 %s635_s21, 4  ;;  %s22_s24 = sshll.u32 %s636_s23, 4  ;;  %s35_s22 = int_to_ptr.vmem [resolvable:$true] %s34_s22  ;;  %s679_s24 = int_to_ptr.vmem [resolvable:$true] %s22_s24 }
   0x6   :  { %s471_s27 = scalar_lea.hbm %s821_s1, 512 }
   0x7   :  { %p472_p0 = scmp.ne.s32.totalorder %s821_s1, %s471_s27  ;;  %p475_p1 = scmp.lt.u32.totalorder %s471_s27, %s821_s1 }
   0x9   :  { %p477_p2 = pnand %p475_p1, %p472_p0 }
   0xb   :  { %480 = shalt.err (!%p477_p2)
}
   0xc   :  { %s481_s8 = scalar_lea.vmem %s35_s22, 512  ;;  %p486_p4 = scmp.lt.s32.totalorder %s35_s22, %s35_s22 }
   0xd   :  { %p482_p3 = scmp.ne.s32.totalorder %s35_s22, %s481_s8  ;;  %p487_p5 = scmp.lt.s32.totalorder %s481_s8, %s481_s8 }
   0xf   :  { %p488_p6 = por %p487_p5, %p486_p4 }
  0x11   :  { %p489_p7 = pnand %p488_p6, %p482_p3 }
  0x13   :  { %492 = shalt.err (!%p489_p7)
}
  0x14   :  { %s637_s9 = smov 128   ;;  %s638_s10 = smov 8  }
  0x15   :  { %40 = dma.hbm_to_vmem [thread:$0]  %s821_s1, 512, %s35_s22, [#allocation6], %s637_s9, %s637_s9, %s638_s10  }
  0x16   :  { %s493_s15 = scalar_lea.hbm %s820_s0, 256 }
  0x17   :  { %p494_p8 = scmp.ne.s32.totalorder %s820_s0, %s493_s15  ;;  %p497_p9 = scmp.lt.u32.totalorder %s493_s15, %s820_s0 }
  0x19   :  { %p499_p10 = pnand %p497_p9, %p494_p8 }
  0x1b   :  { %502 = shalt.err (!%p499_p10)
}
  0x1c   :  { %s503_s20 = scalar_lea.vmem %s679_s24, 256  ;;  %p508_p12 = scmp.lt.s32.totalorder %s679_s24, %s679_s24 }
  0x1d   :  { %p504_p11 = scmp.ne.s32.totalorder %s679_s24, %s503_s20  ;;  %p509_p13 = scmp.lt.s32.totalorder %s503_s20, %s503_s20 }
  0x1f   :  { %p510_p0 = por %p509_p13, %p508_p12 }
  0x21   :  { %p511_p1 = pnand %p510_p0, %p504_p11 }
  0x23   :  { %514 = shalt.err (!%p511_p1)
}
  0x24   :  { %28 = dma.hbm_to_vmem [thread:$0]  %s820_s0, 256, %s679_s24, [#allocation3], %s637_s9, %s637_s9, %s638_s10  }
  0x25   :  { %s639_s22 = smov [#allocation7]   ;;  %s640_s25 = smov [#allocation8]  }
  0x26   :  { %s46_s23 = sshll.u32 %s639_s22, 4  ;;  %s58_s26 = sshll.u32 %s640_s25, 4  ;;  %s47_s23 = int_to_ptr.vmem [resolvable:$true] %s46_s23  ;;  %s716_s26 = int_to_ptr.vmem [resolvable:$true] %s58_s26 }
  0x27   :  { %s515_s29 = scalar_lea.hbm %s822_s2, 512 }
  0x28   :  { %p516_p2 = scmp.ne.s32.totalorder %s822_s2, %s515_s29  ;;  %p519_p3 = scmp.lt.u32.totalorder %s515_s29, %s822_s2 }
  0x2a   :  { %p521_p4 = pnand %p519_p3, %p516_p2 }
  0x2c   :  { %524 = shalt.err (!%p521_p4)
}
  0x2d   :  { %s525_s0 = scalar_lea.vmem %s47_s23, 512  ;;  %p530_p6 = scmp.lt.s32.totalorder %s47_s23, %s47_s23 }
  0x2e   :  { %p526_p5 = scmp.ne.s32.totalorder %s47_s23, %s525_s0  ;;  %p531_p7 = scmp.lt.s32.totalorder %s525_s0, %s525_s0 }
  0x30   :  { %p532_p8 = por %p531_p7, %p530_p6 }
  0x32   :  { %p533_p9 = pnand %p532_p8, %p526_p5 }
  0x34   :  { %536 = shalt.err (!%p533_p9)
}
  0x35   :  { %52 = dma.hbm_to_vmem [thread:$0]  %s822_s2, 512, %s47_s23, [#allocation6], %s637_s9, %s637_s9, %s638_s10  }
  0x36   :  { %s537_s15 = scalar_lea.hbm %s823_s3, 512 }
  0x37   :  { %p538_p10 = scmp.ne.s32.totalorder %s823_s3, %s537_s15  ;;  %p541_p11 = scmp.lt.u32.totalorder %s537_s15, %s823_s3 }
  0x39   :  { %p543_p12 = pnand %p541_p11, %p538_p10 }
  0x3b   :  { %546 = shalt.err (!%p543_p12)
}
  0x3c   :  { %s547_s20 = scalar_lea.vmem %s716_s26, 512  ;;  %p552_p0 = scmp.lt.s32.totalorder %s716_s26, %s716_s26 }
  0x3d   :  { %p548_p13 = scmp.ne.s32.totalorder %s716_s26, %s547_s20  ;;  %p553_p1 = scmp.lt.s32.totalorder %s547_s20, %s547_s20 }
  0x3f   :  { %p554_p2 = por %p553_p1, %p552_p0 }
  0x41   :  { %p555_p3 = pnand %p554_p2, %p548_p13 }
  0x43   :  { %558 = shalt.err (!%p555_p3)
}
  0x44   :  { %64 = dma.hbm_to_vmem [thread:$0]  %s823_s3, 512, %s716_s26, [#allocation9], %s637_s9, %s637_s9, %s638_s10  }
  0x45   :  { %625 = dma.done.wait [#allocation3], 256  }
  0x46   :  { %626 = vsyncadd [#allocation3], 4294967040 }
  0x47   :  { %627 = dma.done.wait [#allocation6], 1024  }
  0x48   :  { %628 = vsyncadd [#allocation6], 4294966272 }
  0x49   :  { %629 = dma.done.wait [#allocation9], 512  }
  0x4a   :  { %630 = vsyncadd [#allocation9], 4294966784  ;;  %v79_v0 = vld [vmem:[#allocation5] sm:$0xff]  ;;  %v80_v1 = vld [vmem:[#allocation5 + $0x8] sm:$0xff]  ;;  %vm83_vm0 = vcmask 261120   ;;  %s641_s3 = smov [#allocation11]  }
  0x4b   :  { %v81_v2 = vld [vmem:[#allocation5 + $0x10] sm:$0xff]  ;;  %v438_v3 = vpack.c.bf16 %v80_v1, %v79_v0  ;;  %v82_v4 = vld [vmem:[#allocation5 + $0x18] sm:$0xff]  ;;  %v169_v5 = vld [vmem:[#allocation7] sm:$0xff]  ;;  %s348_s21 = sshll.u32 %s641_s3, 4  ;;  %s642_s22 = smov [#allocation10]   ;;  %s349_s21 = int_to_ptr.vmem [resolvable:$true] %s348_s21 }
  0x4c   :  { %v170_v6 = vld [vmem:[#allocation7 + $0x8] sm:$0xff]  ;;  %v442_v7 = vpack.c.bf16 %v82_v4, %v81_v2  ;;  %v77_v9 = vld [vmem:[#allocation2] sm:$0xff]  ;;  %v250_v10 = vld [vmem:[#allocation8] sm:$0xff]  ;;  %s336_s23 = sshll.u32 %s642_s22, 4  ;;  %s643_s25 = smov [#allocation13]   ;;  %s760_s23 = int_to_ptr.vmem [resolvable:$true] %s336_s23 }
  0x4d   :  { %v446_v8 = vpack.c.bf16 %v170_v6, %v169_v5  ;;  %439 = vmatprep.subr.bf16.mxu0 %v438_v3  ;;  %413 = vmatprep.mubr.msk.f32.mxu0 %vm83_vm0, %v77_v9  ;;  %v251_v11 = vld [vmem:[#allocation8 + $0x8] sm:$0xff]  ;;  %v171_v12 = vld [vmem:[#allocation7 + $0x10] sm:$0xff]  ;;  %v172_v13 = vld [vmem:[#allocation7 + $0x18] sm:$0xff]  ;;  %s764_s26 = sshll.u32 %s643_s25, 4  ;;  %s559_s27 = scalar_lea.vmem %s349_s21, 256  ;;  %s361_s26 = int_to_ptr.vmem [resolvable:$true] %s764_s26 }
  0x4e   :  { %441 = vmatpush3.bf16.msra.mxu0 %v438_v3  ;;  %v450_v14 = vpack.c.bf16 %v172_v13, %v171_v12  ;;  %v454_v15 = vpack.c.bf16 %v251_v11, %v250_v10  ;;  %v252_v16 = vld [vmem:[#allocation8 + $0x10] sm:$0xff]  ;;  %v253_v17 = vld [vmem:[#allocation8 + $0x18] sm:$0xff]  ;;  %424 = vmatprep.mubr.msk.f32.mxu1 %vm83_vm0, %v77_v9  ;;  %p560_p4 = scmp.ne.s32.totalorder %s349_s21, %s559_s27  ;;  %p564_p5 = scmp.lt.s32.totalorder %s349_s21, %s349_s21 }
  0x4f   :  { %447 = vmatprep.subr.bf16.mxu1 %v446_v8  ;;  %443 = vmatprep.subr.bf16.mxu0 %v442_v7  ;;  %v78_v18 = vld [vmem:[#allocation2 + $0x8] sm:$0xff]  ;;  %v458_v19 = vpack.c.bf16 %v253_v17, %v252_v16  ;;  %p565_p6 = scmp.lt.s32.totalorder %s559_s27, %s559_s27 }
  0x50   :  { %449 = vmatpush3.bf16.msra.mxu1 %v446_v8 }
  0x51   :  { %451 = vmatprep.subr.bf16.mxu1 %v450_v14  ;;  %p566_p7 = por %p565_p6, %p564_p5 }
  0x52   :  { %445 = vmatpush3.bf16.msra.mxu0 %v442_v7 }
  0x53   :  { %455 = vmatprep.subr.bf16.mxu0 %v454_v15  ;;  %p567_p8 = pnand %p566_p7, %p560_p4 }
  0x54   :  { %453 = vmatpush3.bf16.msra.mxu1 %v450_v14 }
  0x55   :  { %414 = vmatmul.mubr.msk.f32.vlgmr.msra.gmra.mrb[0].mxu0 %vm83_vm0, %v78_v18 }
  0x56   :  { %457 = vmatpush3.bf16.msra.mxu0 %v454_v15  ;;  %435 = vmatprep.mubr.msk.f32.mxu0 %vm83_vm0, %v77_v9 }
  0x57   :  { %425 = vmatmul.mubr.msk.f32.vlgmr.msra.gmra.mrb[0].mxu1 %vm83_vm0, %v78_v18  ;;  %459 = vmatprep.subr.bf16.mxu0 %v458_v19 }
  0x5a   :  { %461 = vmatpush3.bf16.msra.mxu0 %v458_v19 }
  0x5d   :  { %436 = vmatmul.mubr.msk.f32.vlgmr.msra.gmra.mrb[2].mxu0 %vm83_vm0, %v78_v18 }
 0x128   :  { %v415_v20 = vpop.f32.mrb[0].mxu0 }
 0x129   :  { %v166_v21 = vmul.f32 0.17677669, %v415_v20  ;;  %v156_v22 = vpop.f32.mrb[1].mxu0 }
 0x12a   :  { %v426_v23 = vpop.f32.mrb[0].mxu1  ;;  %v165_v24 = vmul.f32 0.17677669, %v156_v22 }
 0x12b   :  { %249 = vst.msk [vmem:[#allocation11 + $0x8] sm:$0xff] %vm83_vm0, %v426_v23  ;;  %v239_v25 = vpop.f32.mrb[1].mxu1  ;;  %168 = vst.msk [vmem:[#allocation10 + $0x8] sm:$0xff] %vm83_vm0, %v166_v21 }
 0x12c   :  { %248 = vst.msk [vmem:[#allocation11] sm:$0xff] %vm83_vm0, %v239_v25  ;;  %167 = vst.msk [vmem:[#allocation10] sm:$0xff] %vm83_vm0, %v165_v24 }
 0x12d   :  { %570 = shalt.err (!%p567_p8)
}
 0x12e   :  { %s571_s30 = scalar_lea.hbm %s825_s5, 256 }
 0x12f   :  { %p572_p9 = scmp.ne.s32.totalorder %s825_s5, %s571_s30  ;;  %p575_p10 = scmp.lt.u32.totalorder %s571_s30, %s825_s5 }
 0x131   :  { %p577_p11 = pnand %p575_p10, %p572_p9 }
 0x133   :  { %580 = shalt.err (!%p577_p11)
}
 0x134   :  { %354 = dma.vmem_to_hbm [thread:$0]  %s349_s21, 256, %s825_s5, [#allocation12], %s637_s9, %s637_s9, %s638_s10  }
 0x135   :  { %s581_s13 = scalar_lea.vmem %s760_s23, 256  ;;  %p586_p13 = scmp.lt.s32.totalorder %s760_s23, %s760_s23 }
 0x136   :  { %p582_p12 = scmp.ne.s32.totalorder %s760_s23, %s581_s13  ;;  %p587_p0 = scmp.lt.s32.totalorder %s581_s13, %s581_s13 }
 0x138   :  { %p588_p1 = por %p587_p0, %p586_p13 }
 0x13a   :  { %p589_p2 = pnand %p588_p1, %p582_p12 }
 0x13c   :  { %592 = shalt.err (!%p589_p2)
}
 0x13d   :  { %s593_s16 = scalar_lea.hbm %s824_s4, 256 }
 0x13e   :  { %p594_p3 = scmp.ne.s32.totalorder %s824_s4, %s593_s16  ;;  %p597_p4 = scmp.lt.u32.totalorder %s593_s16, %s824_s4 }
 0x140   :  { %p599_p5 = pnand %p597_p4, %p594_p3 }
 0x142   :  { %602 = shalt.err (!%p599_p5)
}
 0x143   :  { %342 = dma.vmem_to_hbm [thread:$0]  %s760_s23, 256, %s824_s4, [#allocation4], %s637_s9, %s637_s9, %s638_s10   ;;  %v437_v26 = vpop.f32.mrb[2].mxu0 }
 0x144   :  { %330 = vst.msk [vmem:[#allocation13 + $0x8] sm:$0xff] %vm83_vm0, %v437_v26  ;;  %v320_v27 = vpop.f32.mrb[3].mxu0  ;;  %s603_s1 = scalar_lea.vmem %s361_s26, 256  ;;  %p608_p7 = scmp.lt.s32.totalorder %s361_s26, %s361_s26 }
 0x145   :  { %329 = vst.msk [vmem:[#allocation13] sm:$0xff] %vm83_vm0, %v320_v27  ;;  %p604_p6 = scmp.ne.s32.totalorder %s361_s26, %s603_s1  ;;  %p609_p8 = scmp.lt.s32.totalorder %s603_s1, %s603_s1 }
 0x147   :  { %p610_p9 = por %p609_p8, %p608_p7 }
 0x149   :  { %p611_p10 = pnand %p610_p9, %p604_p6 }
 0x14b   :  { %614 = shalt.err (!%p611_p10)
}
 0x14c   :  { %s615_s22 = scalar_lea.hbm %s826_s6, 256 }
 0x14d   :  { %p616_p11 = scmp.ne.s32.totalorder %s826_s6, %s615_s22  ;;  %p619_p12 = scmp.lt.u32.totalorder %s615_s22, %s826_s6 }
 0x14f   :  { %p621_p13 = pnand %p619_p12, %p616_p11 }
 0x151   :  { %624 = shalt.err (!%p621_p13)
}
 0x152   :  { %366 = dma.vmem_to_hbm [thread:$0]  %s361_s26, 256, %s826_s6, [#allocation12], %s637_s9, %s637_s9, %s638_s10  }
 0x153   :  { %631 = dma.done.wait [#allocation4], 256  }
 0x154   :  { %632 = vsyncadd [#allocation4], 4294967040 }
 0x155   :  { %633 = dma.done.wait [#allocation12], 512  }
 0x156   :  { %634 = vsyncadd [#allocation12], 4294966784 }
 0x157   :  { %376 = vsyncpa [#allocation3], 1 }
 0x158   :  { %377 = vsyncpa [#allocation6], 1 }
 0x159   :  { %378 = vsyncpa [#allocation9], 1 }
 0x15a   :  { %379 = vsyncpa [#allocation4], 1 }
 0x15b   :  { %380 = vsyncpa [#allocation12], 1 }

// kernel: tpu_custom_call.1
= control target key start
LH: loop header
LB: loop body
LE: loop exit
PB: predicated region body
PF: predicated region fallthrough
CT: control target
= control target key end

     0   :  { %12 = vsyncpa [#allocation3], 0  ;;  %s820_s0 = inlined_call_operand.hbm [shape: f32[16,32], index: 0, kind: input, shape index: {}]   ;;  %s821_s1 = inlined_call_operand.hbm [shape: f32[32,32], index: 1, kind: input, shape index: {}]   ;;  %s822_s2 = inlined_call_operand.hbm [shape: f32[32,32], index: 2, kind: input, shape index: {}]   ;;  %s823_s3 = inlined_call_operand.hbm [shape: f32[32,32], index: 3, kind: input, shape index: {}]   ;;  %s824_s4 = inlined_call_operand.hbm [shape: f32[16,32], index: 4, kind: output, shape index: {0}]   ;;  %s825_s5 = inlined_call_operand.hbm [shape: f32[16,32], index: 5, kind: output, shape index: {1}]   ;;  %s826_s6 = inlined_call_operand.hbm [shape: f32[16,32], index: 6, kind: output, shape index: {2}]  }
   0x1   :  { %13 = vsyncpa [#allocation6], 0 }
   0x2   :  { %14 = vsyncpa [#allocation9], 0 }
   0x3   :  { %15 = vsyncpa [#allocation4], 0 }
   0x4   :  { %16 = vsyncpa [#allocation12], 0  ;;  %s635_s21 = smov [#allocation5]   ;;  %s636_s23 = smov [#allocation2]  }
   0x5   :  { %s34_s22 = sshll.u32 %s635_s21, 4  ;;  %s22_s24 = sshll.u32 %s636_s23, 4  ;;  %s35_s22 = int_to_ptr.vmem [resolvable:$true] %s34_s22  ;;  %s679_s24 = int_to_ptr.vmem [resolvable:$true] %s22_s24 }
   0x6   :  { %s471_s27 = scalar_lea.hbm %s821_s1, 512 }
   0x7   :  { %p472_p0 = scmp.ne.s32.totalorder %s821_s1, %s471_s27  ;;  %p475_p1 = scmp.lt.u32.totalorder %s471_s27, %s821_s1 }
   0x9   :  { %p477_p2 = pnand %p475_p1, %p472_p0 }
   0xb   :  { %480 = shalt.err (!%p477_p2)
}
   0xc   :  { %s481_s8 = scalar_lea.vmem %s35_s22, 512  ;;  %p486_p4 = scmp.lt.s32.totalorder %s35_s22, %s35_s22 }
   0xd   :  { %p482_p3 = scmp.ne.s32.totalorder %s35_s22, %s481_s8  ;;  %p487_p5 = scmp.lt.s32.totalorder %s481_s8, %s481_s8 }
   0xf   :  { %p488_p6 = por %p487_p5, %p486_p4 }
  0x11   :  { %p489_p7 = pnand %p488_p6, %p482_p3 }
  0x13   :  { %492 = shalt.err (!%p489_p7)
}
  0x14   :  { %s637_s9 = smov 128   ;;  %s638_s10 = smov 8  }
  0x15   :  { %40 = dma.hbm_to_vmem [thread:$0]  %s821_s1, 512, %s35_s22, [#allocation6], %s637_s9, %s637_s9, %s638_s10  }
  0x16   :  { %s493_s15 = scalar_lea.hbm %s820_s0, 256 }
  0x17   :  { %p494_p8 = scmp.ne.s32.totalorder %s820_s0, %s493_s15  ;;  %p497_p9 = scmp.lt.u32.totalorder %s493_s15, %s820_s0 }
  0x19   :  { %p499_p10 = pnand %p497_p9, %p494_p8 }
  0x1b   :  { %502 = shalt.err (!%p499_p10)
}
  0x1c   :  { %s503_s20 = scalar_lea.vmem %s679_s24, 256  ;;  %p508_p12 = scmp.lt.s32.totalorder %s679_s24, %s679_s24 }
  0x1d   :  { %p504_p11 = scmp.ne.s32.totalorder %s679_s24, %s503_s20  ;;  %p509_p13 = scmp.lt.s32.totalorder %s503_s20, %s503_s20 }
  0x1f   :  { %p510_p0 = por %p509_p13, %p508_p12 }
  0x21   :  { %p511_p1 = pnand %p510_p0, %p504_p11 }
  0x23   :  { %514 = shalt.err (!%p511_p1)
}
  0x24   :  { %28 = dma.hbm_to_vmem [thread:$0]  %s820_s0, 256, %s679_s24, [#allocation3], %s637_s9, %s637_s9, %s638_s10  }
  0x25   :  { %s639_s22 = smov [#allocation7]   ;;  %s640_s25 = smov [#allocation8]  }
  0x26   :  { %s46_s23 = sshll.u32 %s639_s22, 4  ;;  %s58_s26 = sshll.u32 %s640_s25, 4  ;;  %s47_s23 = int_to_ptr.vmem [resolvable:$true] %s46_s23  ;;  %s716_s26 = int_to_ptr.vmem [resolvable:$true] %s58_s26 }
  0x27   :  { %s515_s29 = scalar_lea.hbm %s822_s2, 512 }
  0x28   :  { %p516_p2 = scmp.ne.s32.totalorder %s822_s2, %s515_s29  ;;  %p519_p3 = scmp.lt.u32.totalorder %s515_s29, %s822_s2 }
  0x2a   :  { %p521_p4 = pnand %p519_p3, %p516_p2 }
  0x2c   :  { %524 = shalt.err (!%p521_p4)
}
  0x2d   :  { %s525_s0 = scalar_lea.vmem %s47_s23, 512  ;;  %p530_p6 = scmp.lt.s32.totalorder %s47_s23, %s47_s23 }
  0x2e   :  { %p526_p5 = scmp.ne.s32.totalorder %s47_s23, %s525_s0  ;;  %p531_p7 = scmp.lt.s32.totalorder %s525_s0, %s525_s0 }
  0x30   :  { %p532_p8 = por %p531_p7, %p530_p6 }
  0x32   :  { %p533_p9 = pnand %p532_p8, %p526_p5 }
  0x34   :  { %536 = shalt.err (!%p533_p9)
}
  0x35   :  { %52 = dma.hbm_to_vmem [thread:$0]  %s822_s2, 512, %s47_s23, [#allocation6], %s637_s9, %s637_s9, %s638_s10  }
  0x36   :  { %s537_s15 = scalar_lea.hbm %s823_s3, 512 }
  0x37   :  { %p538_p10 = scmp.ne.s32.totalorder %s823_s3, %s537_s15  ;;  %p541_p11 = scmp.lt.u32.totalorder %s537_s15, %s823_s3 }
  0x39   :  { %p543_p12 = pnand %p541_p11, %p538_p10 }
  0x3b   :  { %546 = shalt.err (!%p543_p12)
}
  0x3c   :  { %s547_s20 = scalar_lea.vmem %s716_s26, 512  ;;  %p552_p0 = scmp.lt.s32.totalorder %s716_s26, %s716_s26 }
  0x3d   :  { %p548_p13 = scmp.ne.s32.totalorder %s716_s26, %s547_s20  ;;  %p553_p1 = scmp.lt.s32.totalorder %s547_s20, %s547_s20 }
  0x3f   :  { %p554_p2 = por %p553_p1, %p552_p0 }
  0x41   :  { %p555_p3 = pnand %p554_p2, %p548_p13 }
  0x43   :  { %558 = shalt.err (!%p555_p3)
}
  0x44   :  { %64 = dma.hbm_to_vmem [thread:$0]  %s823_s3, 512, %s716_s26, [#allocation9], %s637_s9, %s637_s9, %s638_s10  }
  0x45   :  { %625 = dma.done.wait [#allocation3], 256  }
  0x46   :  { %626 = vsyncadd [#allocation3], 4294967040 }
  0x47   :  { %627 = dma.done.wait [#allocation6], 1024  }
  0x48   :  { %628 = vsyncadd [#allocation6], 4294966272 }
  0x49   :  { %629 = dma.done.wait [#allocation9], 512  }
  0x4a   :  { %630 = vsyncadd [#allocation9], 4294966784  ;;  %v79_v0 = vld [vmem:[#allocation5] sm:$0xff]  ;;  %v80_v1 = vld [vmem:[#allocation5 + $0x8] sm:$0xff]  ;;  %vm83_vm0 = vcmask 261120   ;;  %s641_s3 = smov [#allocation11]  }
  0x4b   :  { %v81_v2 = vld [vmem:[#allocation5 + $0x10] sm:$0xff]  ;;  %v438_v3 = vpack.c.bf16 %v80_v1, %v79_v0  ;;  %v82_v4 = vld [vmem:[#allocation5 + $0x18] sm:$0xff]  ;;  %v169_v5 = vld [vmem:[#allocation7] sm:$0xff]  ;;  %s348_s21 = sshll.u32 %s641_s3, 4  ;;  %s642_s22 = smov [#allocation10]   ;;  %s349_s21 = int_to_ptr.vmem [resolvable:$true] %s348_s21 }
  0x4c   :  { %v170_v6 = vld [vmem:[#allocation7 + $0x8] sm:$0xff]  ;;  %v442_v7 = vpack.c.bf16 %v82_v4, %v81_v2  ;;  %v77_v9 = vld [vmem:[#allocation2] sm:$0xff]  ;;  %v250_v10 = vld [vmem:[#allocation8] sm:$0xff]  ;;  %s336_s23 = sshll.u32 %s642_s22, 4  ;;  %s643_s25 = smov [#allocation13]   ;;  %s760_s23 = int_to_ptr.vmem [resolvable:$true] %s336_s23 }
  0x4d   :  { %v446_v8 = vpack.c.bf16 %v170_v6, %v169_v5  ;;  %439 = vmatprep.subr.bf16.mxu0 %v438_v3  ;;  %413 = vmatprep.mubr.msk.f32.mxu0 %vm83_vm0, %v77_v9  ;;  %v251_v11 = vld [vmem:[#allocation8 + $0x8] sm:$0xff]  ;;  %v171_v12 = vld [vmem:[#allocation7 + $0x10] sm:$0xff]  ;;  %v172_v13 = vld [vmem:[#allocation7 + $0x18] sm:$0xff]  ;;  %s764_s26 = sshll.u32 %s643_s25, 4  ;;  %s559_s27 = scalar_lea.vmem %s349_s21, 256  ;;  %s361_s26 = int_to_ptr.vmem [resolvable:$true] %s764_s26 }
  0x4e   :  { %441 = vmatpush3.bf16.msra.mxu0 %v438_v3  ;;  %v450_v14 = vpack.c.bf16 %v172_v13, %v171_v12  ;;  %v454_v15 = vpack.c.bf16 %v251_v11, %v250_v10  ;;  %v252_v16 = vld [vmem:[#allocation8 + $0x10] sm:$0xff]  ;;  %v253_v17 = vld [vmem:[#allocation8 + $0x18] sm:$0xff]  ;;  %424 = vmatprep.mubr.msk.f32.mxu1 %vm83_vm0, %v77_v9  ;;  %p560_p4 = scmp.ne.s32.totalorder %s349_s21, %s559_s27  ;;  %p564_p5 = scmp.lt.s32.totalorder %s349_s21, %s349_s21 }
  0x4f   :  { %447 = vmatprep.subr.bf16.mxu1 %v446_v8  ;;  %443 = vmatprep.subr.bf16.mxu0 %v442_v7  ;;  %v78_v18 = vld [vmem:[#allocation2 + $0x8] sm:$0xff]  ;;  %v458_v19 = vpack.c.bf16 %v253_v17, %v252_v16  ;;  %p565_p6 = scmp.lt.s32.totalorder %s559_s27, %s559_s27 }
  0x50   :  { %449 = vmatpush3.bf16.msra.mxu1 %v446_v8 }
  0x51   :  { %451 = vmatprep.subr.bf16.mxu1 %v450_v14  ;;  %p566_p7 = por %p565_p6, %p564_p5 }
  0x52   :  { %445 = vmatpush3.bf16.msra.mxu0 %v442_v7 }
  0x53   :  { %455 = vmatprep.subr.bf16.mxu0 %v454_v15  ;;  %p567_p8 = pnand %p566_p7, %p560_p4 }
  0x54   :  { %453 = vmatpush3.bf16.msra.mxu1 %v450_v14 }
  0x55   :  { %414 = vmatmul.mubr.msk.f32.vlgmr.msra.gmra.mrb[0].mxu0 %vm83_vm0, %v78_v18 }
  0x56   :  { %457 = vmatpush3.bf16.msra.mxu0 %v454_v15  ;;  %435 = vmatprep.mubr.msk.f32.mxu0 %vm83_vm0, %v77_v9 }
  0x57   :  { %425 = vmatmul.mubr.msk.f32.vlgmr.msra.gmra.mrb[0].mxu1 %vm83_vm0, %v78_v18  ;;  %459 = vmatprep.subr.bf16.mxu0 %v458_v19 }
  0x5a   :  { %461 = vmatpush3.bf16.msra.mxu0 %v458_v19 }
  0x5d   :  { %436 = vmatmul.mubr.msk.f32.vlgmr.msra.gmra.mrb[2].mxu0 %vm83_vm0, %v78_v18 }
 0x128   :  { %v415_v20 = vpop.f32.mrb[0].mxu0 }
 0x129   :  { %v166_v21 = vmul.f32 0.17677669, %v415_v20  ;;  %v156_v22 = vpop.f32.mrb[1].mxu0 }
 0x12a   :  { %v426_v23 = vpop.f32.mrb[0].mxu1  ;;  %v165_v24 = vmul.f32 0.17677669, %v156_v22 }
 0x12b   :  { %249 = vst.msk [vmem:[#allocation11 + $0x8] sm:$0xff] %vm83_vm0, %v426_v23  ;;  %v239_v25 = vpop.f32.mrb[1].mxu1  ;;  %168 = vst.msk [vmem:[#allocation10 + $0x8] sm:$0xff] %vm83_vm0, %v166_v21 }
 0x12c   :  { %248 = vst.msk [vmem:[#allocation11] sm:$0xff] %vm83_vm0, %v239_v25  ;;  %167 = vst.msk [vmem:[#allocation10] sm:$0xff] %vm83_vm0, %v165_v24 }
 0x12d   :  { %570 = shalt.err (!%p567_p8)
}
 0x12e   :  { %s571_s30 = scalar_lea.hbm %s825_s5, 256 }
 0x12f   :  { %p572_p9 = scmp.ne.s32.totalorder %s825_s5, %s571_s30  ;;  %p575_p10 = scmp.lt.u32.totalorder %s571_s30, %s825_s5 }
 0x131   :  { %p577_p11 = pnand %p575_p10, %p572_p9 }
 0x133   :  { %580 = shalt.err (!%p577_p11)
}
 0x134   :  { %354 = dma.vmem_to_hbm [thread:$0]  %s349_s21, 256, %s825_s5, [#allocation12], %s637_s9, %s637_s9, %s638_s10  }
 0x135   :  { %s581_s13 = scalar_lea.vmem %s760_s23, 256  ;;  %p586_p13 = scmp.lt.s32.totalorder %s760_s23, %s760_s23 }
 0x136   :  { %p582_p12 = scmp.ne.s32.totalorder %s760_s23, %s581_s13  ;;  %p587_p0 = scmp.lt.s32.totalorder %s581_s13, %s581_s13 }
 0x138   :  { %p588_p1 = por %p587_p0, %p586_p13 }
 0x13a   :  { %p589_p2 = pnand %p588_p1, %p582_p12 }
 0x13c   :  { %592 = shalt.err (!%p589_p2)
}
 0x13d   :  { %s593_s16 = scalar_lea.hbm %s824_s4, 256 }
 0x13e   :  { %p594_p3 = scmp.ne.s32.totalorder %s824_s4, %s593_s16  ;;  %p597_p4 = scmp.lt.u32.totalorder %s593_s16, %s824_s4 }
 0x140   :  { %p599_p5 = pnand %p597_p4, %p594_p3 }
 0x142   :  { %602 = shalt.err (!%p599_p5)
}
 0x143   :  { %342 = dma.vmem_to_hbm [thread:$0]  %s760_s23, 256, %s824_s4, [#allocation4], %s637_s9, %s637_s9, %s638_s10   ;;  %v437_v26 = vpop.f32.mrb[2].mxu0 }
 0x144   :  { %330 = vst.msk [vmem:[#allocation13 + $0x8] sm:$0xff] %vm83_vm0, %v437_v26  ;;  %v320_v27 = vpop.f32.mrb[3].mxu0  ;;  %s603_s1 = scalar_lea.vmem %s361_s26, 256  ;;  %p608_p7 = scmp.lt.s32.totalorder %s361_s26, %s361_s26 }
 0x145   :  { %329 = vst.msk [vmem:[#allocation13] sm:$0xff] %vm83_vm0, %v320_v27  ;;  %p604_p6 = scmp.ne.s32.totalorder %s361_s26, %s603_s1  ;;  %p609_p8 = scmp.lt.s32.totalorder %s603_s1, %s603_s1 }
 0x147   :  { %p610_p9 = por %p609_p8, %p608_p7 }
 0x149   :  { %p611_p10 = pnand %p610_p9, %p604_p6 }
 0x14b   :  { %614 = shalt.err (!%p611_p10)
}
 0x14c   :  { %s615_s22 = scalar_lea.hbm %s826_s6, 256 }
 0x14d   :  { %p616_p11 = scmp.ne.s32.totalorder %s826_s6, %s615_s22  ;;  %p619_p12 = scmp.lt.u32.totalorder %s615_s22, %s826_s6 }
 0x14f   :  { %p621_p13 = pnand %p619_p12, %p616_p11 }
 0x151   :  { %624 = shalt.err (!%p621_p13)
}
 0x152   :  { %366 = dma.vmem_to_hbm [thread:$0]  %s361_s26, 256, %s826_s6, [#allocation12], %s637_s9, %s637_s9, %s638_s10  }
 0x153   :  { %631 = dma.done.wait [#allocation4], 256  }
 0x154   :  { %632 = vsyncadd [#allocation4], 4294967040 }
 0x155   :  { %633 = dma.done.wait [#allocation12], 512  }
 0x156   :  { %634 = vsyncadd [#allocation12], 4294966784 }
 0x157   :  { %376 = vsyncpa [#allocation3], 1 }
 0x158   :  { %377 = vsyncpa [#allocation6], 1 }
 0x159   :  { %378 = vsyncpa [#allocation9], 1 }
 0x15a   :  { %379 = vsyncpa [#allocation4], 1 }
 0x15b   :  { %380 = vsyncpa [#allocation12], 1 }

</bundles_post_ra>
